<compile_context>
chip_gen: v7x
topology: tpu7x:2x2x1
jax: 0.10.0
libtpu: 0.0.40
codegen_flags: <defaults>
</compile_context>

<pallas_src>
import functools

import jax
import jax.numpy as jnp
from jax import lax
from jax.experimental import pallas as pl
from jax.experimental.pallas import tpu as pltpu

_EPS = 1e-8  # matches torch.nn.CosineSimilarity default


def _round_up(a: int, b: int) -> int:
    return ((a + b - 1) // b) * b


def _vmem_budgets():
    """Returns (tile-selection budget, compiler vmem limit) in bytes."""
    cap = 64 * 1024 * 1024  # conservative default (v7x has 64 MiB / TC)
    try:
        info = pltpu.get_tpu_info()
        for name in ("vmem_capacity_bytes", "vmem_size_bytes", "vmem_bytes"):
            val = getattr(info, name, None)
            if val:
                cap = int(val)
                break
    except Exception:
        pass  # not a TPU / API unavailable -> keep the conservative cap
    budget = min((cap * 5) // 8, 100 * 1024 * 1024)  # what tiling may plan for
    limit = min((cap * 3) // 4, 112 * 1024 * 1024)   # scoped-VMEM compiler limit
    return budget, int(limit)


def _select_tiles(N, M, H, itemsize, budget):
    """Pick (TN, TM, TK, blocked_k) under the VMEM budget, biggest tiles first."""
    sub = 16 if itemsize <= 2 else 8  # bf16 packs two rows per sublane
    n_al = _round_up(N, sub)
    m_al = _round_up(M, 128)
    h_al = _round_up(H, 128)

    def vmem_single(tn, tm):
        inputs = 2 * (tn + tm) * H * itemsize  # double-buffered x / y tiles
        out = 2 * tn * tm * 4                  # double-buffered output tile
        f32_tmp = (tn + tm) * H * 4            # in-kernel f32 squares
        epi_tmp = 2 * tn * tm * 4              # dots / denom temporaries
        return inputs + out + f32_tmp + epi_tmp

    def vmem_blocked_fixed(tn, tm):
        out = 2 * tn * tm * 4
        acc = tn * tm * 4
        epi_tmp = 2 * tn * tm * 4
        norms = 4 * (tn + tm) * 4
        return out + acc + epi_tmp + norms

    for tgt in (1024, 512, 256, 128):
        tn = tgt if n_al >= tgt else n_al
        tm = tgt if m_al >= tgt else m_al
        # Preferred: whole hidden dim in one block (fused-norm, no accumulator).
        if vmem_single(tn, tm) <= budget:
            return tn, tm, H, False
        # Otherwise block the hidden dim; largest 128-multiple TK that fits.
        avail = budget - vmem_blocked_fixed(tn, tm)
        if avail <= 0:
            continue
        tk = avail // (2 * (tn + tm) * itemsize)
        tk = min((tk // 128) * 128, 2048, h_al)
        if tk >= 256 or (tk >= 128 and tgt <= 256):
            return tn, tm, tk, True

    # Fallback: small tiles, modest K block.
    tn = 128 if n_al >= 128 else n_al
    tm = 128 if m_al >= 128 else m_al
    tk = min(512, h_al)
    if tk >= h_al:
        return tn, tm, H, False
    return tn, tm, tk, True


def _cos_sim_fused_kernel(x_ref, y_ref, o_ref, *, inv_temp):
    # Single hidden-dim block: full rows are resident in VMEM, so compute the
    # L2 norms in-kernel (cheap VPU/MXU filler relative to the main matmul)
    # and write the scaled result straight to the output tile.
    x = x_ref[...]  # (TN, H)  input dtype (bf16 stays bf16 on the MXU)
    y = y_ref[...]  # (TM, H)
    # x . y^T, contracting the last dim of both; f32 accumulation.
    dots = lax.dot_general(
        x, y, dimension_numbers=(((1,), (1,)), ((), ())),
        preferred_element_type=jnp.float32)            # (TN, TM)
    xf = x.astype(jnp.float32)
    yf = y.astype(jnp.float32)
    xsq = jnp.sum(xf * xf, axis=-1, keepdims=True)     # (TN, 1)
    # y squared-norms produced directly in (1, TM) layout via a ones-row
    # contraction (avoids a lane<->sublane relayout of a row reduction).
    ones_row = jnp.ones((1, y.shape[-1]), jnp.float32)
    ysq = lax.dot_general(
        ones_row, yf * yf, dimension_numbers=(((1,), (1,)), ((), ())),
        preferred_element_type=jnp.float32)            # (1, TM)
    denom = jnp.maximum(jnp.sqrt(xsq) * jnp.sqrt(ysq), _EPS)
    o_ref[...] = (dots * (pl.reciprocal(denom) * inv_temp)).astype(o_ref.dtype)


def _cos_sim_blocked_kernel(x_ref, y_ref, xn_ref, yn_ref, o_ref, acc_ref, *,
                            inv_temp):
    # Blocked hidden dim (very large H): f32 VMEM accumulator over the k axis;
    # L2 norms are precomputed from the unpadded inputs and streamed in as
    # (TN,1)/(1,TM) tiles.
    k = pl.program_id(2)

    @pl.when(k == 0)
    def _():
        acc_ref[...] = jnp.zeros_like(acc_ref)

    acc_ref[...] += lax.dot_general(
        x_ref[...], y_ref[...],
        dimension_numbers=(((1,), (1,)), ((), ())),
        preferred_element_type=jnp.float32)

    @pl.when(k == pl.num_programs(2) - 1)
    def _():
        denom = jnp.maximum(xn_ref[...] * yn_ref[...], _EPS)   # (TN, TM)
        o_ref[...] = (acc_ref[...] * (pl.reciprocal(denom) * inv_temp)
                      ).astype(o_ref.dtype)


@functools.partial(jax.jit, static_argnames=("temperature",))
def similarity(x, y, *, temperature):
    """Pallas equivalent of Similarity(temperature)(x, y).

    Expects the broadcast-pairwise layout:
      x: (N, 1, H) or (N, H)
      y: (1, M, H) or (M, H)
    Returns (N, M) in the promoted input dtype, matching
      F.cosine_similarity(x, y, dim=-1) / temperature  for x=(N,1,H), y=(1,M,H).
    """
    x2d = x.reshape(x.shape[0], x.shape[-1]) if x.ndim == 3 else x
    y2d = y.reshape(y.shape[-2], y.shape[-1]) if y.ndim == 3 else y

    # Common operand dtype for the MXU (do NOT upcast bf16 -> f32 here).
    dt = jnp.promote_types(x2d.dtype, y2d.dtype)
    x2d = x2d.astype(dt)
    y2d = y2d.astype(dt)

    N, H = x2d.shape
    M, Hy = y2d.shape
    assert H == Hy, "hidden dims must match"

    itemsize = jnp.dtype(dt).itemsize
    sub = 16 if itemsize <= 2 else 8
    budget, vmem_limit = _vmem_budgets()
    TN, TM, TK, blocked_k = _select_tiles(N, M, H, itemsize, budget)

    # Megacore (v7x, 2 TCs): guarantee >= 2 blocks over the parallel axes when
    # a tile can be split without breaking alignment. Harmless on 1-TC chips.
    if (_round_up(N, TN) // TN) * (_round_up(M, TM) // TM) == 1:
        if TM >= 256 and (TM // 2) % 128 == 0:
            TM //= 2
        elif TN >= 2 * sub and (TN // 2) % sub == 0:
            TN //= 2

    N_pad = _round_up(N, TN)
    M_pad = _round_up(M, TM)
    H_pad = _round_up(H, TK) if blocked_k else H

    # Only materialize padded HBM copies when a dimension is misaligned.
    x_p = x2d if (N_pad == N and H_pad == H) else jnp.pad(
        x2d, ((0, N_pad - N), (0, H_pad - H)))
    y_p = y2d if (M_pad == M and H_pad == H) else jnp.pad(
        y2d, ((0, M_pad - M), (0, H_pad - H)))
    # Padded rows are zero -> dot 0, norm 0 -> denom clamps to eps -> padded
    # output is exactly 0 (finite) and sliced off below.

    inv_temp = float(1.0 / temperature)

    if not blocked_k:
        grid = (N_pad // TN, M_pad // TM)
        out = pl.pallas_call(
            functools.partial(_cos_sim_fused_kernel, inv_temp=inv_temp),
            out_shape=jax.ShapeDtypeStruct((N_pad, M_pad), dt),
            grid_spec=pltpu.PrefetchScalarGridSpec(
                num_scalar_prefetch=0,
                grid=grid,
                in_specs=[
                    pl.BlockSpec((TN, H), lambda i, j: (i, 0)),   # x rows
                    pl.BlockSpec((TM, H), lambda i, j: (j, 0)),   # y rows
                ],
                out_specs=pl.BlockSpec((TN, TM), lambda i, j: (i, j)),
            ),
            compiler_params=pltpu.CompilerParams(
                dimension_semantics=("parallel", "parallel"),
                vmem_limit_bytes=vmem_limit,
            ),
        )(x_p, y_p)
    else:
        # Hoisted f32 L2 norms from the UNPADDED inputs; only the tiny norm
        # vectors get padded.
        xf = x2d.astype(jnp.float32)
        yf = y2d.astype(jnp.float32)
        xn = jnp.sqrt(jnp.sum(xf * xf, axis=-1, keepdims=True))   # (N, 1)
        yn = jnp.sqrt(jnp.sum(yf * yf, axis=-1))[None, :]         # (1, M)
        if N_pad != N:
            xn = jnp.pad(xn, ((0, N_pad - N), (0, 0)))
        if M_pad != M:
            yn = jnp.pad(yn, ((0, 0), (0, M_pad - M)))

        grid = (N_pad // TN, M_pad // TM, H_pad // TK)
        out = pl.pallas_call(
            functools.partial(_cos_sim_blocked_kernel, inv_temp=inv_temp),
            out_shape=jax.ShapeDtypeStruct((N_pad, M_pad), dt),
            grid_spec=pltpu.PrefetchScalarGridSpec(
                num_scalar_prefetch=0,
                grid=grid,
                in_specs=[
                    pl.BlockSpec((TN, TK), lambda i, j, k: (i, k)),  # x rows
                    pl.BlockSpec((TM, TK), lambda i, j, k: (j, k)),  # y rows
                    pl.BlockSpec((TN, 1), lambda i, j, k: (i, 0)),   # ||x||
                    pl.BlockSpec((1, TM), lambda i, j, k: (0, j)),   # ||y||
                ],
                out_specs=pl.BlockSpec((TN, TM), lambda i, j, k: (i, j)),
                scratch_shapes=[pltpu.VMEM((TN, TM), jnp.float32)],
            ),
            compiler_params=pltpu.CompilerParams(
                dimension_semantics=("parallel", "parallel", "arbitrary"),
                vmem_limit_bytes=vmem_limit,
            ),
        )(x_p, y_p, xn, yn)

    if N_pad != N or M_pad != M:
        out = out[:N, :M]
    return out


def _reference(x, y, temperature):
    # Pure-JAX reference mirroring torch.nn.CosineSimilarity(dim=-1) / temp.
    xb, yb = jnp.broadcast_arrays(x.astype(jnp.float32), y.astype(jnp.float32))
    dot = jnp.sum(xb * yb, axis=-1)
    nx = jnp.linalg.norm(xb, axis=-1)
    ny = jnp.linalg.norm(yb, axis=-1)
    return dot / jnp.maximum(nx * ny, _EPS) / temperature


if __name__ == "__main__":
    key = jax.random.PRNGKey(0)
    kx, ky = jax.random.split(key)

    temperature = 0.05

    # SimCSE-style broadcast inputs: (N, 1, H) vs (1, M, H) -> (N, M)
    N, M, H = 8, 8, 32
    x = jax.random.normal(kx, (N, 1, H), dtype=jnp.float32)
    y = jax.random.normal(ky, (1, M, H), dtype=jnp.float32)

    out = jax.block_until_ready(similarity(x, y, temperature=temperature))
    ref = _reference(x, y, temperature)
    assert out.shape == (N, M)
    assert out.dtype == jnp.float32
    assert jnp.allclose(out, ref, atol=1e-4, rtol=1e-4), (
        f"max abs err {jnp.max(jnp.abs(out - ref))}")

    # Misaligned shapes exercise the conditional-padding path.
    N2, M2, H2 = 5, 9, 40
    x2 = jax.random.normal(kx, (N2, 1, H2), dtype=jnp.float32)
    y2 = jax.random.normal(ky, (1, M2, H2), dtype=jnp.float32)
    out2 = jax.block_until_ready(similarity(x2, y2, temperature=temperature))
    ref2 = _reference(x2, y2, temperature)
    assert out2.shape == (N2, M2)
    assert jnp.allclose(out2, ref2, atol=1e-4, rtol=1e-4), (
        f"max abs err {jnp.max(jnp.abs(out2 - ref2))}")

    print("KERNEL_OK")
</pallas_src>

<mosaic_0001>
module attributes {stable_mosaic.version = 11 : i64} {
  func.func @_cos_sim_fused_kernel(%arg0: i32, %arg1: i32, %arg2: memref<8x32xf32, #tpu.memory_space<vmem>>, %arg3: memref<128x32xf32, #tpu.memory_space<vmem>>, %arg4: memref<8x128xf32, #tpu.memory_space<vmem>>) attributes {dimension_semantics = [#tpu.dimension_semantics<parallel>, #tpu.dimension_semantics<parallel>], iteration_bounds = array<i64: 1, 1>, scalar_prefetch = 0 : i64, scratch_operands = 0 : i64, tpu.core_type = #tpu.core_type<tc>, window_params = [{transform_indices = @transform_0, window_bounds = array<i64: 8, 32>}, {transform_indices = @transform_1, window_bounds = array<i64: 128, 32>}, {transform_indices = @transform_2, window_bounds = array<i64: 8, 128>}]} {
    %c0 = arith.constant 0 : index
    %c0_0 = arith.constant 0 : index
    %0 = vector.load %arg2[%c0, %c0_0] : memref<8x32xf32, #tpu.memory_space<vmem>>, vector<8x32xf32>
    %c0_1 = arith.constant 0 : index
    %c0_2 = arith.constant 0 : index
    %1 = vector.load %arg3[%c0_1, %c0_2] : memref<128x32xf32, #tpu.memory_space<vmem>>, vector<128x32xf32>
    %cst = arith.constant dense<0.000000e+00> : vector<8x128xf32>
    %2 = tpu.matmul %0, %1, %cst {dimension_numbers = #tpu.dot_dimension_numbers<[1], [1], [0], [0], [0, 0, 1, 0], [], []>} : vector<8x32xf32>, vector<128x32xf32>, vector<8x128xf32> -> vector<8x128xf32>
    %3 = arith.mulf %0, %0 : vector<8x32xf32>
    %cst_3 = arith.constant dense<0.000000e+00> : vector<8xf32>
    %4 = vector.multi_reduction <add>, %3, %cst_3 [1] : vector<8x32xf32> to vector<8xf32>
    %5 = vector.shape_cast %4 : vector<8xf32> to vector<8x1xf32>
    %cst_4 = arith.constant 1.000000e+00 : f32
    %6 = vector.broadcast %cst_4 : f32 to vector<1x32xf32>
    %7 = arith.mulf %1, %1 : vector<128x32xf32>
    %cst_5 = arith.constant dense<0.000000e+00> : vector<1x128xf32>
    %8 = tpu.matmul %6, %7, %cst_5 {dimension_numbers = #tpu.dot_dimension_numbers<[1], [1], [0], [0], [0, 0, 1, 0], [], []>} : vector<1x32xf32>, vector<128x32xf32>, vector<1x128xf32> -> vector<1x128xf32>
    %9 = math.sqrt %5 : vector<8x1xf32>
    %10 = math.sqrt %8 : vector<1x128xf32>
    %11 = vector.broadcast %9 : vector<8x1xf32> to vector<8x128xf32>
    %12 = vector.broadcast %10 : vector<1x128xf32> to vector<8x128xf32>
    %13 = arith.mulf %11, %12 : vector<8x128xf32>
    %cst_6 = arith.constant 9.99999993E-9 : f32
    %14 = vector.broadcast %cst_6 : f32 to vector<8x128xf32>
    %15 = arith.maximumf %13, %14 : vector<8x128xf32>
    %16 = tpu.reciprocal %15 : vector<8x128xf32> -> vector<8x128xf32>
    %cst_7 = arith.constant 2.000000e+01 : f32
    %17 = vector.broadcast %cst_7 : f32 to vector<8x128xf32>
    %18 = arith.mulf %16, %17 : vector<8x128xf32>
    %19 = arith.mulf %2, %18 : vector<8x128xf32>
    %c0_8 = arith.constant 0 : index
    %c0_9 = arith.constant 0 : index
    %20 = vector.load %arg4[%c0_8, %c0_9] : memref<8x128xf32, #tpu.memory_space<vmem>>, vector<8x128xf32>
    tpu.vector_store %arg4[%c0_8, %c0_9], %19 {strides = array<i32>} : memref<8x128xf32, #tpu.memory_space<vmem>>, vector<8x128xf32>,
    return
  }
  func.func @transform_0(%arg0: i32, %arg1: i32) -> (i32, i32) {
    %c0_i32 = arith.constant 0 : i32
    %c0_i32_0 = arith.constant 0 : i32
    return %arg0, %c0_i32 : i32, i32
  }
  func.func @transform_1(%arg0: i32, %arg1: i32) -> (i32, i32) {
    %c0_i32 = arith.constant 0 : i32
    %c0_i32_0 = arith.constant 0 : i32
    return %arg1, %c0_i32 : i32, i32
  }
  func.func @transform_2(%arg0: i32, %arg1: i32) -> (i32, i32) {
    %c0_i32 = arith.constant 0 : i32
    return %arg0, %arg1 : i32, i32
  }
}

</mosaic_0001>

<bundles_post_ra>
// kernel: similarity.1
= control target key start
LH: loop header
LB: loop body
LE: loop exit
PB: predicated region body
PF: predicated region fallthrough
CT: control target
= control target key end

     0   :  { %vm29_vm0 = vcmask 261120   ;;  %v567_v2 = vmov 0.0|0.0   ;;  %vm568_vm2 = vmmov 0   ;;  %v569_v9 = vmov 0.0   ;;  %s712_s0 = inlined_call_operand.vmem [shape: f32[8,32], index: 0, kind: input, shape index: {}]   ;;  %s713_s1 = inlined_call_operand.vmem [shape: f32[128,32], index: 1, kind: input, shape index: {}]   ;;  %s714_s2 = inlined_call_operand.hbm [shape: f32[8,128], index: 2, kind: output, shape index: {}]  }
   0x1   :  { %v13_v0 = vld [vmem:[%s713_s1] sm:$0xff]  ;;  %v14_v1 = vld [vmem:[%s713_s1 + $0x8] sm:$0xff]  ;;  %500 = vmatprep.subr.bf16.mxu1 %v567_v2  ;;  %468 = vmatprep.subr.bf16.mxu0 %v567_v2  ;;  %vm597_vm1 = vmpackc.low %vm29_vm0, %vm29_vm0 }
   0x2   :  { %v155_v3 = vmul.f32 %v13_v0, %v13_v0  ;;  %v156_v4 = vmul.f32 %v14_v1, %v14_v1  ;;  %v15_v6 = vld [vmem:[%s713_s1 + $0x10] sm:$0xff]  ;;  %v16_v7 = vld [vmem:[%s713_s1 + $0x18] sm:$0xff]  ;;  %v469_v8 = vpack.c.bf16 %v14_v1, %v13_v0  ;;  %465 = vmatprep.mubr.msk.f32.mxu1 %vm568_vm2, %v569_v9  ;;  %430 = vmatprep.mubr.msk.f32.mxu0 %vm568_vm2, %v569_v9 }
   0x3   :  { %v157_v11 = vmul.f32 %v15_v6, %v15_v6  ;;  %v158_v12 = vmul.f32 %v16_v7, %v16_v7 }
   0x4   :  { %v501_v10 = vpack.c.bf16 %v156_v4, %v155_v3  ;;  %471 = vmatpush3.bf16.xpose.msk.msra.mxu0 %vm597_vm1, %v469_v8 }
   0x5   :  { %472 = vmatprep.subr.bf16.mxu0 %v567_v2 }
   0x6   :  { %503 = vmatpush3.bf16.xpose.msk.msra.mxu1 %vm597_vm1, %v501_v10 }
   0x7   :  { %504 = vmatprep.subr.bf16.mxu1 %v567_v2 }
   0x8   :  { %7 = vsyncpa [#allocation3], 0  ;;  %v473_v13 = vpack.c.bf16 %v16_v7, %v15_v6  ;;  %v616_v14 = vld [vmem:[%s712_s0] sm:$0xff]  ;;  %v505_v15 = vpack.c.bf16 %v158_v12, %v157_v11  ;;  %v18_v18 = vld [vmem:[%s713_s1 + $0x28] sm:$0xff]  ;;  %v570_v54 = vmov 1.0   ;;  %v306_v60 = vlaneseq }
   0x9   :  { %v151_v16 = vmul.f32 %v616_v14, %v616_v14  ;;  %v17_v17 = vld [vmem:[%s713_s1 + $0x20] sm:$0xff]  ;;  %v160_v21 = vmul.f32 %v18_v18, %v18_v18  ;;  %v19_v24 = vld [vmem:[%s713_s1 + $0x30] sm:$0xff]  ;;  %v20_v25 = vld [vmem:[%s713_s1 + $0x38] sm:$0xff] }
   0xa   :  { %v159_v20 = vmul.f32 %v17_v17, %v17_v17  ;;  %v477_v22 = vpack.c.bf16 %v18_v18, %v17_v17  ;;  %v161_v26 = vmul.f32 %v19_v24, %v19_v24  ;;  %v162_v27 = vmul.f32 %v20_v25, %v20_v25  ;;  %v21_v30 = vld [vmem:[%s713_s1 + $0x40] sm:$0xff]  ;;  %v22_v31 = vld [vmem:[%s713_s1 + $0x48] sm:$0xff]  ;;  %v23_v36 = vld [vmem:[%s713_s1 + $0x50] sm:$0xff] }
   0xb   :  { %v152_v19 = vsel %vm29_vm0, %v151_v16, 0.0  ;;  %v481_v28 = vpack.c.bf16 %v20_v25, %v19_v24  ;;  %v163_v32 = vmul.f32 %v21_v30, %v21_v30  ;;  %v164_v33 = vmul.f32 %v22_v31, %v22_v31  ;;  %v24_v37 = vld [vmem:[%s713_s1 + $0x58] sm:$0xff]  ;;  %v25_v42 = vld [vmem:[%s713_s1 + $0x60] sm:$0xff]  ;;  %v26_v43 = vld [vmem:[%s713_s1 + $0x68] sm:$0xff] }
   0xc   :  { %475 = vmatpush3.bf16.xpose.msk.msra.mxu0 %vm597_vm1, %v473_v13  ;;  %153 = vadd.xlane.f32.xlu0 %v152_v19  ;;  %v509_v23 = vpack.c.bf16 %v160_v21, %v159_v20  ;;  %v513_v29 = vpack.c.bf16 %v162_v27, %v161_v26  ;;  %v485_v34 = vpack.c.bf16 %v22_v31, %v21_v30  ;;  %v27_v48 = vld [vmem:[%s713_s1 + $0x70] sm:$0xff]  ;;  %v28_v49 = vld [vmem:[%s713_s1 + $0x78] sm:$0xff]  ;;  %v307_v62 = vshrl.u32 %v306_v60, 7  ;;  %s571_s1 = smov [#allocation2]  }
   0xd   :  { %476 = vmatprep.subr.bf16.mxu0 %v567_v2  ;;  %v517_v35 = vpack.c.bf16 %v164_v33, %v163_v32  ;;  %v165_v38 = vmul.f32 %v23_v36, %v23_v36  ;;  %v166_v39 = vmul.f32 %v24_v37, %v24_v37  ;;  %v489_v40 = vpack.c.bf16 %v24_v37, %v23_v36  ;;  %s322_s14 = sshll.u32 %s571_s1, 4  ;;  %s323_s14 = int_to_ptr.vmem [resolvable:$true] %s322_s14 }
   0xe   :  { %507 = vmatpush3.bf16.xpose.msk.msra.mxu1 %vm597_vm1, %v505_v15  ;;  %v167_v44 = vmul.f32 %v25_v42, %v25_v42  ;;  %v168_v45 = vmul.f32 %v26_v43, %v26_v43  ;;  %v493_v46 = vpack.c.bf16 %v26_v43, %v25_v42  ;;  %v169_v50 = vmul.f32 %v27_v48, %v27_v48  ;;  %s543_s15 = scalar_lea.vmem %s323_s14, 128  ;;  %p548_p1 = scmp.lt.s32.totalorder %s323_s14, %s323_s14 }
   0xf   :  { %508 = vmatprep.subr.bf16.mxu1 %v567_v2  ;;  %v521_v41 = vpack.c.bf16 %v166_v39, %v165_v38  ;;  %v170_v51 = vmul.f32 %v28_v49, %v28_v49  ;;  %v497_v52 = vpack.c.bf16 %v28_v49, %v27_v48  ;;  %p544_p0 = scmp.ne.s32.totalorder %s323_s14, %s543_s15  ;;  %p549_p2 = scmp.lt.s32.totalorder %s543_s15, %s543_s15 }
  0x10   :  { %v525_v47 = vpack.c.bf16 %v168_v45, %v167_v44 }
  0x11   :  { %v529_v53 = vpack.c.bf16 %v170_v51, %v169_v50  ;;  %p550_p3 = por %p549_p2, %p548_p1 }
  0x13   :  { %p551_p4 = pnand %p550_p3, %p544_p0 }
  0x14   :  { %479 = vmatpush3.bf16.xpose.msk.msra.mxu0 %vm597_vm1, %v477_v22 }
  0x15   :  { %480 = vmatprep.subr.bf16.mxu0 %v567_v2 }
  0x16   :  { %511 = vmatpush3.bf16.xpose.msk.msra.mxu1 %vm597_vm1, %v509_v23 }
  0x17   :  { %512 = vmatprep.subr.bf16.mxu1 %v567_v2 }
  0x1c   :  { %483 = vmatpush3.bf16.xpose.msk.msra.mxu0 %vm597_vm1, %v481_v28 }
  0x1d   :  { %484 = vmatprep.subr.bf16.mxu0 %v567_v2 }
  0x1e   :  { %515 = vmatpush3.bf16.xpose.msk.msra.mxu1 %vm597_vm1, %v513_v29 }
  0x1f   :  { %516 = vmatprep.subr.bf16.mxu1 %v567_v2 }
  0x24   :  { %487 = vmatpush3.bf16.xpose.msk.msra.mxu0 %vm597_vm1, %v485_v34 }
  0x25   :  { %488 = vmatprep.subr.bf16.mxu0 %v567_v2 }
  0x26   :  { %519 = vmatpush3.bf16.xpose.msk.msra.mxu1 %vm597_vm1, %v517_v35 }
  0x27   :  { %520 = vmatprep.subr.bf16.mxu1 %v567_v2 }
  0x2c   :  { %491 = vmatpush3.bf16.xpose.msk.msra.mxu0 %vm597_vm1, %v489_v40 }
  0x2d   :  { %492 = vmatprep.subr.bf16.mxu0 %v567_v2 }
  0x2e   :  { %523 = vmatpush3.bf16.xpose.msk.msra.mxu1 %vm597_vm1, %v521_v41 }
  0x2f   :  { %524 = vmatprep.subr.bf16.mxu1 %v567_v2 }
  0x34   :  { %495 = vmatpush3.bf16.xpose.msk.msra.mxu0 %vm597_vm1, %v493_v46 }
  0x35   :  { %496 = vmatprep.subr.bf16.mxu0 %v567_v2 }
  0x36   :  { %527 = vmatpush3.bf16.xpose.msk.msra.mxu1 %vm597_vm1, %v525_v47 }
  0x37   :  { %528 = vmatprep.subr.bf16.mxu1 %v567_v2  ;;  %v308_v2 = vsub.s32 0, %v307_v62 }
  0x3c   :  { %499 = vmatpush3.bf16.xpose.msk.msra.mxu0 %vm597_vm1, %v497_v52 }
  0x3e   :  { %531 = vmatpush3.bf16.xpose.msk.msra.mxu1 %vm597_vm1, %v529_v53 }
  0x43   :  { %431 = vmatmul.mubr.msk.f32.vlgmr.msra.gmra.mrb[0].mxu0 %vm29_vm0, %v616_v14 }
  0x45   :  { %466 = vmatmul.mubr.msk.f32.vlgmr.msra.gmra.mrb[0].mxu1 %vm29_vm0, %v570_v54 }
  0x99   :  { %v154_v55 = vpop.xlane.xlu0 %153 }
  0x9a   :  { %537 = vrsqrt.f32 %v154_v55  ;;  %vm294_vm3 = vcmp.eq.f32.partialorder %v154_v55, inf  ;;  %v297_v3 = vand.u32 2147483648, %v154_v55  ;;  %vm296_vm5 = vcmp.eq.f32.partialorder %v154_v55, 0.0 }
  0xa4   :  { %v538_v61 = vpop.eup %537 }
  0xa5   :  { %v293_v63 = vmul.f32 %v538_v61, %v154_v55 }
  0xa7   :  { %v295_v5 = vsel %vm294_vm3, %v154_v55, %v293_v63 }
  0xa8   :  { %v298_v9 = vsel %vm296_vm5, %v297_v3, %v295_v5 }
 0x116   :  { %v147_v56 = vpop.f32.mrb[0].mxu0 }
 0x117   :  { %v432_v58 = vpop.f32.mrb[1].mxu0 }
 0x118   :  { %v288_v57 = vpop.f32.mrb[0].mxu1 }
 0x119   :  { %539 = vrsqrt.f32 %v288_v57  ;;  %v467_v59 = vpop.f32.mrb[1].mxu1  ;;  %vm301_vm4 = vcmp.eq.f32.partialorder %v288_v57, inf  ;;  %v304_v4 = vand.u32 2147483648, %v288_v57  ;;  %vm303_vm6 = vcmp.eq.f32.partialorder %v288_v57, 0.0 }
 0x123   :  { %v540_v0 = vpop.eup %539 }
 0x124   :  { %v300_v1 = vmul.f32 %v540_v0, %v288_v57 }
 0x126   :  { %v302_v6 = vsel %vm301_vm4, %v288_v57, %v300_v1 }
 0x127   :  { %v305_v7 = vsel %vm303_vm6, %v304_v4, %v302_v6 }
 0x128   :  { %v309_v8 = vrot.slane %v305_v7, %v308_v2 }
 0x12a   :  { %v310_v10 = vmul.f32 %v309_v8, %v298_v9 }
 0x12c   :  { %v311_v11 = vmax.f32 %v310_v10, 1e-08 }
 0x12e   :  { %541 = vrcp.f32 %v311_v11 }
 0x138   :  { %v542_v12 = vpop.eup %541 }
 0x139   :  { %v313_v13 = vmul.f32 20.0, %v542_v12 }
 0x13b   :  { %v314_v14 = vmul.f32 %v313_v13, %v147_v56 }
 0x13d   :  { %315 = vst [vmem:[#allocation2] sm:$0xff] %v314_v14 }
 0x13e   :  { %554 = shalt.err (!%p551_p4)
}
 0x13f   :  { %s555_s18 = scalar_lea.hbm %s714_s2, 128 }
 0x140   :  { %p556_p5 = scmp.ne.s32.totalorder %s714_s2, %s555_s18  ;;  %p559_p6 = scmp.lt.u32.totalorder %s555_s18, %s714_s2 }
 0x142   :  { %p561_p7 = pnand %p559_p6, %p556_p5 }
 0x144   :  { %564 = shalt.err (!%p561_p7)
}
 0x145   :  { %325 = dma.vmem_to_hbm [thread:$0]  %s323_s14, 128, %s714_s2, [#allocation3]  }
 0x146   :  { %565 = dma.done.wait [#allocation3], 128  }
 0x147   :  { %566 = vsyncadd [#allocation3], 4294967168 }
 0x148   :  { %329 = vsyncpa [#allocation3], 1 }

</bundles_post_ra>
